<compile_context>
chip_gen: v6e
topology: v6e:2x2x1
jax: 0.10.0
libtpu: 0.0.40
codegen_flags: <defaults>
</compile_context>

<pallas_src>
import math
from functools import partial

import jax
import jax.numpy as jnp
from jax import lax
from jax.experimental import pallas as pl
from jax.experimental.pallas import tpu as pltpu

_COUT_PAD = 8  # pad the tiny RGB Cout (3 or 4) up to one sublane group for the MXU


# ----------------------------------------------------------------------------
# Pallas kernel: modulated 1x1 conv (pre-modulated weights) + prev_rgb add
# ----------------------------------------------------------------------------

def rgb_mod_conv_kernel(wm_ref, x_ref, *rest, have_prev, n_rgb):
    """One (sample, spatial-tile) grid step.

    wm_ref:   (1, COUT_PAD, Cin)  bf16  per-sample modulated weights (resident per b)
    x_ref:    (1, Cin, THW)       bf16  feature-map tile, flattened spatial on lanes
    prev_ref: (1, n_rgb, THW)     bf16  previous rgb tile (present only if have_prev)
    out_ref:  (1, n_rgb, THW)     f32
    """
    if have_prev:
        prev_ref, out_ref = rest
    else:
        (out_ref,) = rest

    # Single MXU matmul per tile: (8, Cin) @ (Cin, THW) -> (8, THW), f32 accumulate.
    acc = jnp.dot(wm_ref[0], x_ref[0], preferred_element_type=jnp.float32)
    rgb = acc[:n_rgb, :]
    if have_prev:
        rgb = rgb + prev_ref[0].astype(jnp.float32)
    out_ref[0, :, :] = rgb


# ----------------------------------------------------------------------------
# Tile sizing helpers (per-generation VMEM aware)
# ----------------------------------------------------------------------------

def _round_up(v, m):
    return -(-v // m) * m


def _vmem_budget():
    """(per-kernel working-set budget, vmem_limit_bytes) from the chip's VMEM size."""
    phys = 64 << 20  # conservative fallback (v7x per-core VMEM)
    try:
        info = pltpu.get_tpu_info()
        phys = int(getattr(info, "vmem_capacity_bytes", phys)) or phys
    except Exception:
        pass
    # ~1/4 of physical for the double-buffered streams: 32 MiB on v5e/v6e, 16 MiB on v7x.
    budget = min(max(phys // 4, 8 << 20), 32 << 20)
    limit = int(min(phys - phys // 8, 2 * budget + (8 << 20)))
    return budget, limit


def _pick_lane_tile(hw_pad, cap_elems):
    """Largest multiple of 128 that divides hw_pad (itself a multiple of 128) and is
    <= cap_elems (at least 128)."""
    cap = max(128, (int(cap_elems) // 128) * 128)
    best, t = 128, 128
    top = min(hw_pad, cap)
    while t <= top:
        if hw_pad % t == 0:
            best = t
        t += 128
    return best


# ----------------------------------------------------------------------------
# Wrapper
# ----------------------------------------------------------------------------

def rgb_block_forward(params, x, prev_rgb, istyle, *, upsample):
    """RGBBlock.forward.  x: (B,Cin,H,W), prev_rgb: (B,n_rgb,H,W) or None,
    istyle: (B, latent).  Returns (B, n_rgb, H*, W*) f32 (2x spatial if upsample)."""
    B, Cin, H, W = x.shape
    HW = H * W
    n_rgb = params['conv_w'].shape[0]

    # --- hoisted style Linear + weight modulation (tiny; stays in XLA) -------------
    style = istyle.astype(jnp.float32) @ params['to_style_w'].T + params['to_style_b']  # (B, Cin)
    wm = params['conv_w'].reshape(n_rgb, Cin)[None, :, :] * (style[:, None, :] + 1.0)    # (B, n_rgb, Cin)
    wm_pad = (jnp.zeros((B, _COUT_PAD, Cin), jnp.float32)
              .at[:, :n_rgb, :].set(wm).astype(jnp.bfloat16))                            # (B, 8, Cin)

    # --- lane-dense spatial tiling: pad HW up to a multiple of 128 ------------------
    HW_pad = _round_up(HW, 128)
    x_f = x.reshape(B, Cin, HW).astype(jnp.bfloat16)
    if HW_pad != HW:
        x_f = jnp.pad(x_f, ((0, 0), (0, 0), (0, HW_pad - HW)))

    have_prev = prev_rgb is not None
    prev_f = None
    if have_prev:
        prev_f = prev_rgb.reshape(B, n_rgb, HW).astype(jnp.bfloat16)
        if HW_pad != HW:
            prev_f = jnp.pad(prev_f, ((0, 0), (0, 0), (0, HW_pad - HW)))

    # --- per-generation tile sizing --------------------------------------------------
    budget, vmem_limit = _vmem_budget()
    # bytes of double-buffered VMEM per spatial lane:
    #   x: 2 bufs * Cin * 2B (bf16);  out: 2 * n_rgb * 4B;  prev: 2 * n_rgb * 2B; + slack
    per_thw = 4 * Cin + 8 * n_rgb + (4 * n_rgb if have_prev else 0) + 64
    thw = _pick_lane_tile(HW_pad, budget // per_thw)
    n_tiles = HW_pad // thw

    inputs = [wm_pad, x_f]
    in_specs = [
        pl.BlockSpec((1, _COUT_PAD, Cin), lambda b, j: (b, 0, 0)),
        pl.BlockSpec((1, Cin, thw), lambda b, j: (b, 0, j)),
    ]
    if have_prev:
        inputs.append(prev_f)
        in_specs.append(pl.BlockSpec((1, n_rgb, thw), lambda b, j: (b, 0, j)))

    bytes_accessed = (x_f.size * 2 + wm_pad.size * 2 + B * n_rgb * HW_pad * 4
                      + (prev_f.size * 2 if have_prev else 0))
    cost = pl.CostEstimate(flops=2 * B * _COUT_PAD * Cin * HW_pad,
                           transcendentals=0,
                           bytes_accessed=bytes_accessed)

    kern = partial(rgb_mod_conv_kernel, have_prev=have_prev, n_rgb=n_rgb)
    rgb = pl.pallas_call(
        kern,
        out_shape=jax.ShapeDtypeStruct((B, n_rgb, HW_pad), jnp.float32),
        grid=(B, n_tiles),
        in_specs=in_specs,
        out_specs=pl.BlockSpec((1, n_rgb, thw), lambda b, j: (b, 0, j)),
        compiler_params=pltpu.CompilerParams(
            dimension_semantics=("parallel", "parallel"),
            vmem_limit_bytes=vmem_limit),
        cost_estimate=cost,
    )(*inputs)

    rgb = rgb[:, :, :HW].reshape(B, n_rgb, H, W)
    if upsample:
        rgb = upsample2x_blur(rgb)
    return rgb


# ----------------------------------------------------------------------------
# Fused epilogue: bilinear-2x upsample (align_corners=False) composed with the
# 3x3 [1,2,1]^T[1,2,1]/16 blur (reflect pad), as ONE separable 2-phase polyphase
# filter per axis.  even/odd output taps (prev, cur, next) = (.3125,.625,.0625) /
# (.0625,.625,.3125); the two outermost output samples get the blur-reflect fix.
# ----------------------------------------------------------------------------

def _up2_blur_along(x, axis):
    n = x.shape[axis]
    sl = partial(lax.slice_in_dim, axis=axis)
    xm = jnp.concatenate([sl(x, 0, 1), sl(x, 0, n - 1)], axis=axis)      # x[i-1], edge clamp
    xp = jnp.concatenate([sl(x, 1, n), sl(x, n - 1, n)], axis=axis)      # x[i+1], edge clamp
    even = 0.3125 * xm + 0.625 * x + 0.0625 * xp                         # -> output 2i
    odd = 0.0625 * xm + 0.625 * x + 0.3125 * xp                          # -> output 2i+1
    # blur reflect-padding corrections at the two outermost output samples
    e0 = 0.875 * sl(x, 0, 1) + 0.125 * sl(xp, 0, 1)                      # output 0
    even = jnp.concatenate([e0, sl(even, 1, n)], axis=axis)
    o_last = 0.125 * sl(xm, n - 1, n) + 0.875 * sl(x, n - 1, n)          # output 2n-1
    odd = jnp.concatenate([sl(odd, 0, n - 1), o_last], axis=axis)
    out = jnp.stack([even, odd], axis=axis + 1)
    return out.reshape(x.shape[:axis] + (2 * n,) + x.shape[axis + 1:])


def upsample2x_blur(x):  # NCHW -> NC(2H)(2W)
    return _up2_blur_along(_up2_blur_along(x, 2), 3)


# ----------------------------------------------------------------------------
# Plain-JAX reference epilogue (unfused chain) — used only for the semantics check
# ----------------------------------------------------------------------------

def _up2_along(x, axis):
    # Exact PyTorch bilinear, scale=2, align_corners=False (half-pixel, edge clamp).
    n = x.shape[axis]
    first = lax.slice_in_dim(x, 0, 1, axis=axis)
    last = lax.slice_in_dim(x, n - 1, n, axis=axis)
    prev = jnp.concatenate([first, lax.slice_in_dim(x, 0, n - 1, axis=axis)], axis=axis)
    nxt = jnp.concatenate([lax.slice_in_dim(x, 1, n, axis=axis), last], axis=axis)
    even = 0.25 * prev + 0.75 * x
    odd = 0.75 * x + 0.25 * nxt
    stacked = jnp.stack([even, odd], axis=axis + 1)
    new_shape = x.shape[:axis] + (2 * n,) + x.shape[axis + 1:]
    return stacked.reshape(new_shape)


def upsample2x(x):          # NCHW
    return _up2_along(_up2_along(x, 2), 3)


def blur3x3(x):             # kornia filter2d([1,2,1]^T[1,2,1], normalized, reflect)
    B, C, H, W = x.shape
    xp = jnp.pad(x, ((0, 0), (0, 0), (1, 1), (1, 1)), mode='reflect')
    k1 = [1.0, 2.0, 1.0]
    out = jnp.zeros_like(x)
    for dy in range(3):
        for dx in range(3):
            out = out + (k1[dy] * k1[dx] / 16.0) * xp[:, :, dy:dy + H, dx:dx + W]
    return out


# ----------------------------------------------------------------------------
# Parameter init (mirrors RGBBlock.__init__)
# ----------------------------------------------------------------------------

def init_rgb_block_params(key, latent_dim, input_channel, rgba=False):
    out_filters = 4 if rgba else 3
    k1, k2, k3 = jax.random.split(key, 3)
    lim = 1.0 / math.sqrt(latent_dim)
    to_style_w = jax.random.uniform(k1, (input_channel, latent_dim), jnp.float32, -lim, lim)
    to_style_b = jax.random.uniform(k2, (input_channel,), jnp.float32, -lim, lim)
    # Conv2DMod weight: kaiming_normal_(fan_in, leaky_relu a=0) -> std = sqrt(2/fan_in)
    std = math.sqrt(2.0 / input_channel)
    conv_w = std * jax.random.normal(k3, (out_filters, input_channel, 1, 1), jnp.float32)
    return dict(to_style_w=to_style_w, to_style_b=to_style_b, conv_w=conv_w)


# ----------------------------------------------------------------------------
# Pure-JAX reference (semantics check; uses the un-fused upsample->blur chain)
# ----------------------------------------------------------------------------

def rgb_block_reference(params, x, prev_rgb, istyle, *, upsample):
    B, Cin, H, W = x.shape
    n_rgb = params['conv_w'].shape[0]
    s = istyle @ jnp.transpose(params['to_style_w']) + params['to_style_b']   # (B, Cin)
    wm = params['conv_w'].reshape(n_rgb, Cin)[None] * (s[:, None, :] + 1.0)   # (B, n_rgb, Cin)
    out = jnp.einsum('boc,bchw->bohw', wm, x, precision='highest')
    if prev_rgb is not None:
        out = out + prev_rgb
    if upsample:
        out = blur3x3(upsample2x(out))
    return out


# ----------------------------------------------------------------------------

if __name__ == "__main__":
    key = jax.random.PRNGKey(0)
    kp, kx, kr, ks, kx2 = jax.random.split(key, 5)

    B, Cin, H, W = 2, 16, 16, 16
    latent_dim = 32

    params = init_rgb_block_params(kp, latent_dim, Cin)
    x = jax.random.normal(kx, (B, Cin, H, W), jnp.float32)
    prev_rgb = jax.random.normal(kr, (B, 3, H, W), jnp.float32)
    istyle = jax.random.normal(ks, (B, latent_dim), jnp.float32)

    # Path 1: mid-network RGBBlock (prev_rgb present, upsample=True).
    out = rgb_block_forward(params, x, prev_rgb, istyle, upsample=True)
    out = jax.block_until_ready(out)
    assert out.shape == (B, 3, 2 * H, 2 * W), out.shape
    assert bool(jnp.all(jnp.isfinite(out)))
    ref = rgb_block_reference(params, x, prev_rgb, istyle, upsample=True)
    rel = float(jnp.max(jnp.abs(out - ref)) / (jnp.max(jnp.abs(ref)) + 1e-6))
    assert rel < 5e-2, rel

    # Path 2: first/last-block specialization (prev_rgb=None, upsample=False).
    out2 = rgb_block_forward(params, x, None, istyle, upsample=False)
    out2 = jax.block_until_ready(out2)
    assert out2.shape == (B, 3, H, W), out2.shape
    assert bool(jnp.all(jnp.isfinite(out2)))
    ref2 = rgb_block_reference(params, x, None, istyle, upsample=False)
    rel2 = float(jnp.max(jnp.abs(out2 - ref2)) / (jnp.max(jnp.abs(ref2)) + 1e-6))
    assert rel2 < 5e-2, rel2

    # Path 3: non-128-aligned spatial size (exercises the HW padding path).
    H3 = W3 = 12
    x3 = jax.random.normal(kx2, (1, Cin, H3, W3), jnp.float32)
    out3 = rgb_block_forward(params, x3, None, istyle[:1], upsample=True)
    out3 = jax.block_until_ready(out3)
    assert out3.shape == (1, 3, 2 * H3, 2 * W3), out3.shape
    ref3 = rgb_block_reference(params, x3, None, istyle[:1], upsample=True)
    rel3 = float(jnp.max(jnp.abs(out3 - ref3)) / (jnp.max(jnp.abs(ref3)) + 1e-6))
    assert rel3 < 5e-2, rel3

    print("KERNEL_OK")
</pallas_src>

<mosaic_0001>
module attributes {stable_mosaic.version = 11 : i64} {
  func.func @rgb_mod_conv_kernel(%arg0: i32, %arg1: i32, %arg2: memref<1x8x16xbf16, #tpu.memory_space<vmem>>, %arg3: memref<1x16x256xbf16, #tpu.memory_space<vmem>>, %arg4: memref<1x3x256xbf16, #tpu.memory_space<vmem>>, %arg5: memref<1x3x256xf32, #tpu.memory_space<vmem>>) attributes {dimension_semantics = [#tpu.dimension_semantics<parallel>, #tpu.dimension_semantics<parallel>], iteration_bounds = array<i64: 2, 1>, scalar_prefetch = 0 : i64, scratch_operands = 0 : i64, tpu.core_type = #tpu.core_type<tc>, window_params = [{transform_indices = @transform_0, window_bounds = array<i64: 1, 8, 16>}, {transform_indices = @transform_1, window_bounds = array<i64: 1, 16, 256>}, {transform_indices = @transform_2, window_bounds = array<i64: 1, 3, 256>}, {transform_indices = @transform_3, window_bounds = array<i64: 1, 3, 256>}]} {
    %c0 = arith.constant 0 : index
    %c0_0 = arith.constant 0 : index
    %c0_1 = arith.constant 0 : index
    %0 = vector.load %arg2[%c0, %c0_0, %c0_1] : memref<1x8x16xbf16, #tpu.memory_space<vmem>>, vector<1x8x16xbf16>
    %1 = vector.shape_cast %0 : vector<1x8x16xbf16> to vector<8x16xbf16>
    %c0_2 = arith.constant 0 : index
    %c0_3 = arith.constant 0 : index
    %c0_4 = arith.constant 0 : index
    %2 = vector.load %arg3[%c0_2, %c0_3, %c0_4] : memref<1x16x256xbf16, #tpu.memory_space<vmem>>, vector<1x16x256xbf16>
    %3 = vector.shape_cast %2 : vector<1x16x256xbf16> to vector<16x256xbf16>
    %cst = arith.constant dense<0.000000e+00> : vector<8x256xf32>
    %4 = tpu.matmul %1, %3, %cst {dimension_numbers = #tpu.dot_dimension_numbers<[1], [0], [0], [1], [0, 0, 1, 1], [], []>} : vector<8x16xbf16>, vector<16x256xbf16>, vector<8x256xf32> -> vector<8x256xf32>
    %5 = vector.extract_strided_slice %4 {offsets = [0, 0], sizes = [3, 256], strides = [1, 1]} : vector<8x256xf32> to vector<3x256xf32>
    %c0_5 = arith.constant 0 : index
    %c0_6 = arith.constant 0 : index
    %c0_7 = arith.constant 0 : index
    %6 = vector.load %arg4[%c0_5, %c0_6, %c0_7] : memref<1x3x256xbf16, #tpu.memory_space<vmem>>, vector<1x3x256xbf16>
    %7 = vector.shape_cast %6 : vector<1x3x256xbf16> to vector<3x256xbf16>
    %8 = arith.extf %7 : vector<3x256xbf16> to vector<3x256xf32>
    %9 = arith.addf %5, %8 : vector<3x256xf32>
    %c0_8 = arith.constant 0 : index
    %c0_9 = arith.constant 0 : index
    %c0_10 = arith.constant 0 : index
    %10 = vector.load %arg5[%c0_8, %c0_9, %c0_10] : memref<1x3x256xf32, #tpu.memory_space<vmem>>, vector<1x3x256xf32>
    %11 = vector.shape_cast %10 : vector<1x3x256xf32> to vector<3x256xf32>
    %12 = vector.shape_cast %9 : vector<3x256xf32> to vector<1x3x256xf32>
    tpu.vector_store %arg5[%c0_8, %c0_9, %c0_10], %12 {strides = array<i32>} : memref<1x3x256xf32, #tpu.memory_space<vmem>>, vector<1x3x256xf32>,
    return
  }
  func.func @transform_0(%arg0: i32, %arg1: i32) -> (i32, i32, i32) {
    %c0_i32 = arith.constant 0 : i32
    %c0_i32_0 = arith.constant 0 : i32
    %c0_i32_1 = arith.constant 0 : i32
    return %arg0, %c0_i32, %c0_i32_0 : i32, i32, i32
  }
  func.func @transform_1(%arg0: i32, %arg1: i32) -> (i32, i32, i32) {
    %c0_i32 = arith.constant 0 : i32
    %c0_i32_0 = arith.constant 0 : i32
    return %arg0, %c0_i32, %arg1 : i32, i32, i32
  }
  func.func @transform_2(%arg0: i32, %arg1: i32) -> (i32, i32, i32) {
    %c0_i32 = arith.constant 0 : i32
    %c0_i32_0 = arith.constant 0 : i32
    return %arg0, %c0_i32, %arg1 : i32, i32, i32
  }
  func.func @transform_3(%arg0: i32, %arg1: i32) -> (i32, i32, i32) {
    %c0_i32 = arith.constant 0 : i32
    %c0_i32_0 = arith.constant 0 : i32
    return %arg0, %c0_i32, %arg1 : i32, i32, i32
  }
}

</mosaic_0001>

<bundles_post_ra>
// kernel: tpu_custom_call.1
= control target key start
LH: loop header
LB: loop body
LE: loop exit
PB: predicated region body
PF: predicated region fallthrough
CT: control target
= control target key end

     0   :  { %8 = vsyncpa [#allocation3], 0  ;;  %s757_s0 = inlined_call_operand.vmem [shape: bf16[2,8,16], index: 0, kind: input, shape index: {}]   ;;  %s758_s1 = inlined_call_operand.hbm [shape: bf16[2,16,256], index: 1, kind: input, shape index: {}]   ;;  %s759_s2 = inlined_call_operand.vmem [shape: bf16[2,3,256], index: 2, kind: input, shape index: {}]   ;;  %s760_s3 = inlined_call_operand.vmem [shape: f32[2,3,256], index: 3, kind: output, shape index: {}]  }
   0x1   :  { %10 = vsyncpa [#allocation3 + $0x1], 0  ;;  %s655_s12 = smov 0   ;;  %s657_s13 = smov 0  }
   0x2   :  { %s659_s14 = smov 0   ;;  %s661_s15 = smov 0  }
   0x3   :  { %s663_s16 = smov 0   ;;  %s665_s17 = smov 0  }
   0x4 LB: > { %s468_s18 = sadd.s32 4294967295, %s629_s17   ;;  %s28_s19 = sadd.s32 1, %s625_s16  ;;  %s629_s17 = sphi %s665_s17, %s16_s17   ;;  %s625_s16 = sphi %s663_s16, %s768_s16   ;;  %s621_s15 = sphi %s661_s15, %s767_s15   ;;  %s617_s14 = sphi %s659_s14, %s766_s14   ;;  %s613_s13 = sphi %s657_s13, %s765_s13   ;;  %s609_s12 = sphi %s655_s12, %s764_s12  }
   0x5   : > { %p30_p0 = scmp.ge.s32.totalorder %s28_s19, 2  ;;  %s63_s20 = sadd.s32 1, %s617_s14 }
   0x6   : > { %p70_p1 = scmp.ne.s32.totalorder %s617_s14, %s613_s13  ;;  %p71_p2 = scmp.eq.s32.totalorder %s629_s17, 0 }
   0x7   : > { %s770_s19 = smov (%p30_p0, %s28_s19), 0  ;;  %p76_p4 = scmp.ne.s32.totalorder %s613_s13, %s609_s12 }
   0x8   : > { %p691_p3 = por %p71_p2, %p70_p1  ;;  %s58_s22 = ssub.s32 %s625_s16, %s770_s19 }
   0x9   : > { %p77_p5 = scmp.eq.s32.totalorder %s468_s18, 0  ;;  %p61_p6 = scmp.eq.s32.totalorder %s58_s22, 0 }
   0xa   : > { %p496_p8 = scmp.lt.s32.totalorder %s629_s17, 2  ;;  %s163_s25 = sand.u32 1, %s617_s14  }
   0xb   : > { %p698_p7 = por %p77_p5, %p76_p4  ;;  %s487_s26 = sshll.u32 %s625_s16, 8 }
   0xc   : > { %s704_s24 = scalar_select %p61_p6, %s617_s14, %s63_s20  }
   0xd   : > { %s472_s27 = sshll.u32 %s163_s25, 4  ;;  %s175_s30 = scalar_lea.hbm %s758_s1, %s487_s26 }
   0xe   : > { %s167_s4 = scalar_lea.vmem [#allocation2], %s472_s27  ;;  %p713_p9 = pnand %p496_p8, %p691_p3 }
   0xf   : > { %s176_s5 = sshll.u32 %s167_s4, 4  ;;  %s164_s7 = scalar_lea.sflag [#allocation3], %s163_s25  ;;  %s177_s5 = int_to_ptr.vmem [resolvable:$true] %s176_s5 }
  0x10   : > { %p553_p10 = pneg %p713_p9  ;;  %s564_s8 = scalar_lea.vmem %s177_s5, 256 }
  0x11   : > { %p565_p11 = scmp.ne.s32.totalorder %s177_s5, %s564_s8  ;;  %s631_s9 = smov [#allocation2]  }
  0x12   : > { %s569_s10 = sshll.u32 %s631_s9, 4  ;;  %s570_s10 = int_to_ptr.vmem [resolvable:$false] %s569_s10 }
  0x13   : > { %p567_p12 = pnand %p565_p11, %p553_p10  ;;  %s571_s11 = scalar_lea.vmem %s570_s10, 512 }
  0x14   : > { %p572_p0 = scmp.lt.s32.totalorder %s177_s5, %s570_s10  ;;  %p573_p1 = scmp.lt.s32.totalorder %s571_s11, %s564_s8 }
  0x15   : > { %p568_p13 = pneg %p567_p12 }
  0x16   : > { %p574_p2 = por %p573_p1, %p572_p0 }
  0x18   : > { %p575_p3 = pnand %p574_p2, %p568_p13 }
  0x1a   : > { %578 = shalt.err (!%p575_p3)
}
  0x1b   : > { %s632_s12 = smov 128   ;;  %s633_s18 = smov 8  }
  0x1c   : > { %495 = dma.hbm_to_vmem [thread:$0]  (!%p713_p9), %s175_s30, 256, %s177_s5, %s164_s7, %s632_s12, %s632_s12, %s633_s18  }
  0x1d   : > { %p475_p4 = scmp.ge.s32.totalorder %s629_s17, 1  ;;  %p197_p5 = scmp.lt.s32.totalorder %s629_s17, 3 }
  0x1f   : > { %p198_p6 = pnand %p475_p4, %p197_p5 }
  0x20   : > { %s203_s20 = sand.u32 (!%p198_p6), 1, %s613_s13  }
  0x21   : > { %201 = sbr.rel (%p198_p6) target bundleno = 245 (0xf5), region = 32  ;;  %s476_s21 = sshll.u32 (!%p198_p6), %s203_s20, 4 }
  0x22   : > { %s204_s22 = scalar_lea.sflag (!%p198_p6), [#allocation3], %s203_s20  ;;  %s207_s25 = scalar_lea.vmem (!%p198_p6), [#allocation2], %s476_s21 }
  0x26   : > { %604 = dma.done.wait (%p698_p7), %s204_s22, 256  }
  0x27   : > { %606 = vsyncadd (%p698_p7), %s204_s22, 4294967040  ;;  %p247_p8 = scmp.lt.s32.totalorder %s621_s15, 1  ;;  %v634_v0 = vmov 0   ;;  %v548_v1 = vld [vmem:[%s207_s25 + $0x4] ss:$8 sps:$4 sm:$0xff]   ;;  %vm286_vm0 = vcmask 130048  }
  0x28   : > { %322 = vmatprep.mubr.bf16.mxu0 %v634_v0  ;;  %v550_v2 = vld [vmem:[%s207_s25] ss:$8 sps:$4 sm:$0xff]   ;;  %304 = vmatprep.subr.bf16.mxu0 %v548_v1 }
  0x29   : > { %s772_s15 = smov (!%p247_p8, %s621_s15), 1  ;;  %305 = vmatpush1.bf16.msra.mxu0 %v550_v2 }
  0x2a   : > { %s477_s26 = sshll.u32 %s772_s15, 2  ;;  %s489_s5 = sshll.u32 %s772_s15, 3 }
  0x2b   : > { %s250_s29 = scalar_lea.vmem %s757_s0, %s477_s26  ;;  %s260_s4 = scalar_lea.vmem %s759_s2, %s477_s26 }
  0x2c   : > { %v273_v3 = vld [vmem:[%s250_s29] sm:$0xf]  ;;  %s270_s8 = scalar_lea.vmem %s760_s3, %s489_s5 }
  0x2d   : > { %484 = vmatmul.mubr.msk.bf16.vlgmr.msra.gmra.mxu0 %vm286_vm0, %v273_v3  ;;  %v331_v4 = vld [vmem:[%s260_s4] sm:$0xf] }
  0x2e   : > { %v332_v5 = vunpack.c.l.bf16 %v331_v4 }
  0x30   : > { %v334_v6 = vcombine.high %v332_v5, %v332_v5 }
  0xed   : > { %v324_v7 = vpop.f32.mrf.mxu0 }
  0xee   : > { %v336_v9 = vadd.f32 %v332_v5, %v324_v7 }
  0xef   : > { %v326_v8 = vpop.f32.mrf.mxu0 }
  0xf0   : > { %v337_v10 = vadd.f32 %v334_v6, %v326_v8 }
  0xf1   : > { %v328_v11 = vpop.f32.mrf.mxu0 }
  0xf2   : > { %v340_v12 = vcombine.low %v336_v9, %v337_v10 }
  0xf3   : > { %v329_v13 = vpop.f32.mrf.mxu0 }
  0xf4   : > { %342 = vst [vmem:[%s270_s8] sm:$0x77] %v340_v12 }
  0xf5 PF: > { %s16_s17 = sadd.s32 1, %s629_s17   ;;  %s764_s12 = smov %s613_s13 }
  0xf6   : > { %p13_p7 = scmp.ge.s32.totalorder %s16_s17, 4   ;;  %s765_s13 = smov %s617_s14 }
  0xf7   : > { %s766_s14 = smov %s704_s24  ;;  %s767_s15 = smov %s625_s16 }
  0xf8   : > { %s768_s16 = smov %s770_s19  ;;  %15 = sbr.rel (!%p13_p7) target bundleno = 4 (0x4), region = 78 }
  0xfd   :  { %373 = vsyncpa [#allocation3], 1 }
  0xfe   :  { %375 = vsyncpa [#allocation3 + $0x1], 1 }

</bundles_post_ra>
